<compile_context>
chip_gen: v7x
topology: tpu7x:2x2x1
jax: 0.10.0
libtpu: 0.0.40
codegen_flags: <defaults>
</compile_context>

<pallas_src>
import functools

import jax
import jax.numpy as jnp
from jax import lax
from jax.experimental import pallas as pl
from jax.experimental.pallas import tpu as pltpu


def _round_up(x, m):
    return ((x + m - 1) // m) * m


def _triplet_center_loss_kernel(targets_ref, inputs_ref, centers_ref, present_ref,
                                out_ref, *, margin, actual_b):
    t = targets_ref[...]          # (TB, 1) int32   (padded rows hold -1)
    x = inputs_ref[...]           # (TB, D) f32
    c = centers_ref[...]          # (C, D)  f32     (resident full block)
    present = present_ref[...]    # (1, C)  f32     (1.0 iff class appears in the real batch)

    tb = t.shape[0]
    C, D = c.shape

    # same_class[i, c] = (t[i] == c); one-hot is all-zero for padded rows (t == -1).
    class_iota = lax.broadcasted_iota(jnp.int32, (tb, C), 1)
    same_class = (t == class_iota)                                            # (TB, C) bool
    onehot = same_class.astype(jnp.float32)

    # ---- dist_ap: explicit per-sample diff (cancellation-safe) ||x[i] - centers[t[i]]||
    centers_batch = jnp.dot(onehot, c, preferred_element_type=jnp.float32)    # (TB, D)
    diff = x - centers_batch
    d2_ap = jnp.sum(diff * diff, axis=1, keepdims=True)                       # (TB, 1)
    dist_ap = jnp.sqrt(jnp.maximum(d2_ap, 1e-12))

    # ---- dist_an: squared sample-to-class distances via the norm expansion (MXU)
    xc = lax.dot_general(x, c, dimension_numbers=(((1,), (1,)), ((), ())),
                         preferred_element_type=jnp.float32)                  # (TB, C)
    xn = jnp.sum(x * x, axis=1, keepdims=True)                                # (TB, 1)
    # (1, C) row of center squared norms via a tiny MXU matmul (no (C,1)->(1,C) transpose).
    cn_row = lax.dot_general(jnp.ones((1, D), jnp.float32), c * c,
                             dimension_numbers=(((1,), (1,)), ((), ())),
                             preferred_element_type=jnp.float32)              # (1, C)
    d2_cls = jnp.maximum(xn + cn_row - 2.0 * xc, 1e-12)                       # (TB, C)

    # negatives: classes present in the batch and different from t[i]
    neg_mask = (present > 0.5) & jnp.logical_not(same_class)                  # (TB, C)
    d2_an = jnp.min(jnp.where(neg_mask, d2_cls, jnp.float32(jnp.inf)),
                    axis=1, keepdims=True)                                    # (TB, 1)
    dist_an = jnp.sqrt(d2_an)   # sqrt only on the reduced vector; +inf if no negative class

    # ---- per-row loss / precision contributions; padded rows contribute zero
    row_ids = lax.broadcasted_iota(jnp.int32, (tb, 1), 0) + pl.program_id(0) * tb
    valid = row_ids < actual_b

    hinge = jnp.maximum(dist_ap - dist_an + jnp.float32(margin), 0.0)         # (TB, 1)
    hinge = jnp.where(valid, hinge, 0.0)
    correct = jnp.where(valid & (dist_an > dist_ap),
                        jnp.float32(1.0), jnp.float32(0.0))                   # (TB, 1)

    out_ref[:, 0:1] = hinge
    out_ref[:, 1:2] = correct


def triplet_center_loss(inputs, targets, centers, margin=0.0, tile_b=256):
    """Pallas TPU implementation of TripletCenterLoss.forward -> (loss, prec)."""
    B, D = inputs.shape
    C, Dc = centers.shape
    assert Dc == D, "centers feature dim must match inputs feature dim"

    inputs = inputs.astype(jnp.float32)
    centers = centers.astype(jnp.float32)
    targets = targets.astype(jnp.int32)

    # Class-presence mask over the WHOLE batch (cross-tile quantity, computed once here).
    present = jnp.any(targets[:, None] == jnp.arange(C, dtype=jnp.int32)[None, :],
                      axis=0).astype(jnp.float32).reshape(1, C)

    # Row-tile size: multiple of 8, no larger than the (rounded) batch.
    tb = _round_up(min(int(tile_b), _round_up(B, 8)), 8)
    b_pad = _round_up(B, tb)
    num_tiles = b_pad // tb

    if b_pad != B:
        inputs = jnp.pad(inputs, ((0, b_pad - B), (0, 0)))
        targets = jnp.pad(targets, (0, b_pad - B), constant_values=-1)
    targets2d = targets.reshape(b_pad, 1)

    kernel = functools.partial(_triplet_center_loss_kernel,
                               margin=float(margin), actual_b=B)

    cost = pl.CostEstimate(
        flops=4 * b_pad * C * D + 8 * b_pad * D + 6 * b_pad * C,
        transcendentals=2 * b_pad,
        bytes_accessed=4 * (b_pad * D + b_pad + C * D + C + 2 * b_pad),
    )

    partials = pl.pallas_call(
        kernel,
        out_shape=jax.ShapeDtypeStruct((b_pad, 2), jnp.float32),
        grid=(num_tiles,),
        in_specs=[
            pl.BlockSpec((tb, 1), lambda i: (i, 0)),   # targets (row tile)
            pl.BlockSpec((tb, D), lambda i: (i, 0)),   # inputs  (row tile)
            pl.BlockSpec((C, D), lambda i: (0, 0)),    # centers (resident)
            pl.BlockSpec((1, C), lambda i: (0, 0)),    # class-presence mask (resident)
        ],
        out_specs=pl.BlockSpec((tb, 2), lambda i: (i, 0)),
        compiler_params=pltpu.CompilerParams(
            dimension_semantics=("parallel",),         # safe: disjoint output blocks per tile
            vmem_limit_bytes=32 * 1024 * 1024,
        ),
        cost_estimate=cost,
    )(targets2d, inputs, centers, present)

    # Final tiny reduction (B*2 floats) of per-row partials; padded rows are already zero.
    loss = jnp.sum(partials[:, 0]) / jnp.float32(B)
    prec = jnp.sum(partials[:, 1]) / jnp.float32(B)
    return loss, prec


def _reference(inputs, targets, centers, margin=0.0):
    """Pure-JAX mirror of the PyTorch forward (for a sanity check)."""
    centers_batch = centers[targets]                                   # (B, D)
    diff = centers_batch[None, :, :] - inputs[:, None, :]              # (B, B, D)
    dist = jnp.sqrt(jnp.clip(jnp.sum(diff * diff, axis=2), 1e-12))
    mask = targets[:, None] == targets[None, :]
    dist_ap = jnp.max(jnp.where(mask, dist, -jnp.inf), axis=1)
    dist_an = jnp.min(jnp.where(mask, jnp.inf, dist), axis=1)
    loss = jnp.mean(jnp.maximum(dist_ap - dist_an + margin, 0.0))
    prec = jnp.mean((dist_an > dist_ap).astype(jnp.float32))
    return loss, prec


if __name__ == "__main__":
    num_classes = 10     # module default: centers = Parameter(randn(num_classes, num_classes))
    feat_dim = num_classes

    key = jax.random.PRNGKey(0)

    # --- test 1: module-default sizes, single tile ---
    batch, margin = 8, 0.0
    k_in, k_cen, k_tgt, key = jax.random.split(key, 4)
    inputs = jax.random.normal(k_in, (batch, feat_dim), dtype=jnp.float32)
    centers = jax.random.normal(k_cen, (num_classes, feat_dim), dtype=jnp.float32)
    targets = jax.random.randint(k_tgt, (batch,), 0, num_classes, dtype=jnp.int32)

    loss, prec = triplet_center_loss(inputs, targets, centers, margin=margin)
    jax.block_until_ready((loss, prec))
    ref_loss, ref_prec = _reference(inputs, targets, centers, margin=margin)
    assert jnp.allclose(loss, ref_loss, rtol=1e-3, atol=1e-3), (loss, ref_loss)
    assert jnp.allclose(prec, ref_prec, rtol=1e-3, atol=1e-3), (prec, ref_prec)

    # --- test 2: multi-tile grid + padding path (batch not a multiple of the tile) ---
    batch2, margin2 = 20, 0.25
    k_in2, k_tgt2, key = jax.random.split(key, 3)
    inputs2 = jax.random.normal(k_in2, (batch2, feat_dim), dtype=jnp.float32)
    targets2 = jax.random.randint(k_tgt2, (batch2,), 0, num_classes, dtype=jnp.int32)

    loss2, prec2 = triplet_center_loss(inputs2, targets2, centers, margin=margin2, tile_b=8)
    jax.block_until_ready((loss2, prec2))
    ref_loss2, ref_prec2 = _reference(inputs2, targets2, centers, margin=margin2)
    assert jnp.allclose(loss2, ref_loss2, rtol=1e-3, atol=1e-3), (loss2, ref_loss2)
    assert jnp.allclose(prec2, ref_prec2, rtol=1e-3, atol=1e-3), (prec2, ref_prec2)

    print("KERNEL_OK")
</pallas_src>

<mosaic_0001>
module attributes {stable_mosaic.version = 11 : i64} {
  func.func @_triplet_center_loss_kernel(%arg0: i32, %arg1: memref<8x1xi32, #tpu.memory_space<vmem>>, %arg2: memref<8x10xf32, #tpu.memory_space<vmem>>, %arg3: memref<10x10xf32, #tpu.memory_space<vmem>>, %arg4: memref<1x10xf32, #tpu.memory_space<vmem>>, %arg5: memref<8x2xf32, #tpu.memory_space<vmem>>) attributes {dimension_semantics = [#tpu.dimension_semantics<parallel>], iteration_bounds = array<i64: 1>, scalar_prefetch = 0 : i64, scratch_operands = 0 : i64, tpu.core_type = #tpu.core_type<tc>, window_params = [{transform_indices = @transform_0, window_bounds = array<i64: 8, 1>}, {transform_indices = @transform_1, window_bounds = array<i64: 8, 10>}, {pipeline_mode = #tpu.pipeline_mode<synchronous>, transform_indices = @transform_2, window_bounds = array<i64: 10, 10>}, {pipeline_mode = #tpu.pipeline_mode<synchronous>, transform_indices = @transform_3, window_bounds = array<i64: 1, 10>}, {transform_indices = @transform_4, window_bounds = array<i64: 8, 2>}]} {
    %c0 = arith.constant 0 : index
    %c0_0 = arith.constant 0 : index
    %0 = vector.load %arg1[%c0, %c0_0] : memref<8x1xi32, #tpu.memory_space<vmem>>, vector<8x1xi32>
    %c0_1 = arith.constant 0 : index
    %c0_2 = arith.constant 0 : index
    %1 = vector.load %arg2[%c0_1, %c0_2] : memref<8x10xf32, #tpu.memory_space<vmem>>, vector<8x10xf32>
    %c0_3 = arith.constant 0 : index
    %c0_4 = arith.constant 0 : index
    %2 = vector.load %arg3[%c0_3, %c0_4] : memref<10x10xf32, #tpu.memory_space<vmem>>, vector<10x10xf32>
    %c0_5 = arith.constant 0 : index
    %c0_6 = arith.constant 0 : index
    %3 = vector.load %arg4[%c0_5, %c0_6] : memref<1x10xf32, #tpu.memory_space<vmem>>, vector<1x10xf32>
    %4 = tpu.iota {dimensions = array<i32: 1>} : vector<8x10xi32>
    %5 = vector.broadcast %0 : vector<8x1xi32> to vector<8x10xi32>
    %6 = arith.cmpi eq, %5, %4 : vector<8x10xi32>
    %7 = arith.extui %6 : vector<8x10xi1> to vector<8x10xi32>
    %8 = arith.sitofp %7 : vector<8x10xi32> to vector<8x10xf32>
    %cst = arith.constant dense<0.000000e+00> : vector<8x10xf32>
    %9 = tpu.matmul %8, %2, %cst {dimension_numbers = #tpu.dot_dimension_numbers<[1], [0], [0], [1], [0, 0, 1, 1], [], []>} : vector<8x10xf32>, vector<10x10xf32>, vector<8x10xf32> -> vector<8x10xf32>
    %10 = arith.subf %1, %9 : vector<8x10xf32>
    %11 = arith.mulf %10, %10 : vector<8x10xf32>
    %cst_7 = arith.constant dense<0.000000e+00> : vector<8xf32>
    %12 = vector.multi_reduction <add>, %11, %cst_7 [1] : vector<8x10xf32> to vector<8xf32>
    %13 = vector.shape_cast %12 : vector<8xf32> to vector<8x1xf32>
    %cst_8 = arith.constant 9.99999996E-13 : f32
    %14 = vector.broadcast %cst_8 : f32 to vector<8x1xf32>
    %15 = arith.maximumf %13, %14 : vector<8x1xf32>
    %16 = math.sqrt %15 : vector<8x1xf32>
    %cst_9 = arith.constant dense<0.000000e+00> : vector<8x10xf32>
    %17 = tpu.matmul %1, %2, %cst_9 {dimension_numbers = #tpu.dot_dimension_numbers<[1], [1], [0], [0], [0, 0, 1, 0], [], []>} : vector<8x10xf32>, vector<10x10xf32>, vector<8x10xf32> -> vector<8x10xf32>
    %18 = arith.mulf %1, %1 : vector<8x10xf32>
    %cst_10 = arith.constant dense<0.000000e+00> : vector<8xf32>
    %19 = vector.multi_reduction <add>, %18, %cst_10 [1] : vector<8x10xf32> to vector<8xf32>
    %20 = vector.shape_cast %19 : vector<8xf32> to vector<8x1xf32>
    %cst_11 = arith.constant 1.000000e+00 : f32
    %21 = vector.broadcast %cst_11 : f32 to vector<1x10xf32>
    %22 = arith.mulf %2, %2 : vector<10x10xf32>
    %cst_12 = arith.constant dense<0.000000e+00> : vector<1x10xf32>
    %23 = tpu.matmul %21, %22, %cst_12 {dimension_numbers = #tpu.dot_dimension_numbers<[1], [1], [0], [0], [0, 0, 1, 0], [], []>} : vector<1x10xf32>, vector<10x10xf32>, vector<1x10xf32> -> vector<1x10xf32>
    %24 = vector.broadcast %20 : vector<8x1xf32> to vector<8x10xf32>
    %25 = vector.broadcast %23 : vector<1x10xf32> to vector<8x10xf32>
    %26 = arith.addf %24, %25 : vector<8x10xf32>
    %cst_13 = arith.constant 2.000000e+00 : f32
    %27 = vector.broadcast %cst_13 : f32 to vector<8x10xf32>
    %28 = arith.mulf %27, %17 : vector<8x10xf32>
    %29 = arith.subf %26, %28 : vector<8x10xf32>
    %cst_14 = arith.constant 9.99999996E-13 : f32
    %30 = vector.broadcast %cst_14 : f32 to vector<8x10xf32>
    %31 = arith.maximumf %29, %30 : vector<8x10xf32>
    %cst_15 = arith.constant 5.000000e-01 : f32
    %32 = vector.broadcast %cst_15 : f32 to vector<1x10xf32>
    %33 = arith.cmpf ogt, %3, %32 : vector<1x10xf32>
    %cst_16 = arith.constant dense<true> : vector<8x10xi1>
    %34 = arith.xori %6, %cst_16 : vector<8x10xi1>
    %35 = vector.broadcast %33 : vector<1x10xi1> to vector<8x10xi1>
    %36 = arith.andi %35, %34 : vector<8x10xi1>
    %cst_17 = arith.constant 0x7F800000 : f32
    %37 = vector.broadcast %cst_17 : f32 to vector<8x10xf32>
    %38 = arith.select %36, %31, %37 : vector<8x10xi1>, vector<8x10xf32>
    %cst_18 = arith.constant dense<0x7F800000> : vector<8xf32>
    %39 = vector.multi_reduction <minimumf>, %38, %cst_18 [1] : vector<8x10xf32> to vector<8xf32>
    %40 = vector.shape_cast %39 : vector<8xf32> to vector<8x1xf32>
    %41 = math.sqrt %40 : vector<8x1xf32>
    %42 = tpu.iota {dimensions = array<i32: 0>} : vector<8x1xi32>
    %c8_i32 = arith.constant 8 : i32
    %43 = arith.muli %arg0, %c8_i32 : i32
    %44 = vector.broadcast %43 : i32 to vector<8x1xi32>
    %45 = arith.addi %42, %44 : vector<8x1xi32>
    %c8_i32_19 = arith.constant 8 : i32
    %46 = vector.broadcast %c8_i32_19 : i32 to vector<8x1xi32>
    %47 = arith.cmpi slt, %45, %46 : vector<8x1xi32>
    %48 = arith.subf %16, %41 : vector<8x1xf32>
    %cst_20 = arith.constant 0.000000e+00 : f32
    %49 = vector.broadcast %cst_20 : f32 to vector<8x1xf32>
    %50 = arith.addf %48, %49 : vector<8x1xf32>
    %cst_21 = arith.constant 0.000000e+00 : f32
    %51 = vector.broadcast %cst_21 : f32 to vector<8x1xf32>
    %52 = arith.maximumf %50, %51 : vector<8x1xf32>
    %cst_22 = arith.constant 0.000000e+00 : f32
    %53 = vector.broadcast %cst_22 : f32 to vector<8x1xf32>
    %54 = arith.select %47, %52, %53 : vector<8x1xi1>, vector<8x1xf32>
    %55 = arith.cmpf ogt, %41, %16 : vector<8x1xf32>
    %56 = arith.andi %47, %55 : vector<8x1xi1>
    %cst_23 = arith.constant 1.000000e+00 : f32
    %cst_24 = arith.constant 0.000000e+00 : f32
    %57 = vector.broadcast %cst_23 : f32 to vector<8x1xf32>
    %58 = vector.broadcast %cst_24 : f32 to vector<8x1xf32>
    %59 = arith.select %56, %57, %58 : vector<8x1xi1>, vector<8x1xf32>
    %c0_25 = arith.constant 0 : index
    %c0_26 = arith.constant 0 : index
    %60 = vector.load %arg5[%c0_25, %c0_26] : memref<8x2xf32, #tpu.memory_space<vmem>>, vector<8x1xf32>
    tpu.vector_store %arg5[%c0_25, %c0_26], %54 {strides = array<i32>} : memref<8x2xf32, #tpu.memory_space<vmem>>, vector<8x1xf32>,
    %c0_27 = arith.constant 0 : index
    %c1 = arith.constant 1 : index
    %61 = vector.load %arg5[%c0_27, %c1] : memref<8x2xf32, #tpu.memory_space<vmem>>, vector<8x1xf32>
    tpu.vector_store %arg5[%c0_27, %c1], %59 {strides = array<i32>} : memref<8x2xf32, #tpu.memory_space<vmem>>, vector<8x1xf32>,
    return
  }
  func.func @transform_0(%arg0: i32) -> (i32, i32) {
    %c0_i32 = arith.constant 0 : i32
    %c0_i32_0 = arith.constant 0 : i32
    return %arg0, %c0_i32 : i32, i32
  }
  func.func @transform_1(%arg0: i32) -> (i32, i32) {
    %c0_i32 = arith.constant 0 : i32
    %c0_i32_0 = arith.constant 0 : i32
    return %arg0, %c0_i32 : i32, i32
  }
  func.func @transform_2(%arg0: i32) -> (i32, i32) {
    %c0_i32 = arith.constant 0 : i32
    %c0_i32_0 = arith.constant 0 : i32
    %c0_i32_1 = arith.constant 0 : i32
    return %c0_i32, %c0_i32_0 : i32, i32
  }
  func.func @transform_3(%arg0: i32) -> (i32, i32) {
    %c0_i32 = arith.constant 0 : i32
    %c0_i32_0 = arith.constant 0 : i32
    %c0_i32_1 = arith.constant 0 : i32
    return %c0_i32, %c0_i32_0 : i32, i32
  }
  func.func @transform_4(%arg0: i32) -> (i32, i32) {
    %c0_i32 = arith.constant 0 : i32
    %c0_i32_0 = arith.constant 0 : i32
    return %arg0, %c0_i32 : i32, i32
  }
}

</mosaic_0001>

<bundles_post_ra>
// kernel: tpu_custom_call.1
= control target key start
LH: loop header
LB: loop body
LE: loop exit
PB: predicated region body
PF: predicated region fallthrough
CT: control target
= control target key end

     0   :  { %9 = vsyncpa [#allocation3], 0  ;;  %s433_s15 = smov [#allocation2]   ;;  %s527_s0 = inlined_call_operand.vmem [shape: s32[8,1], index: 0, kind: input, shape index: {}]   ;;  %s528_s1 = inlined_call_operand.hbm [shape: f32[8,10], index: 1, kind: input, shape index: {}]   ;;  %s529_s2 = inlined_call_operand.vmem [shape: f32[10,10], index: 2, kind: input, shape index: {}]   ;;  %s530_s3 = inlined_call_operand.vmem [shape: f32[1,10], index: 3, kind: input, shape index: {}]   ;;  %s531_s4 = inlined_call_operand.vmem [shape: f32[8,2], index: 4, kind: output, shape index: {}]  }
   0x1   :  { %s18_s16 = sshll.u32 %s433_s15, 4  ;;  %s409_s19 = scalar_lea.hbm %s528_s1, 128  ;;  %s19_s16 = int_to_ptr.vmem [resolvable:$true] %s18_s16 }
   0x2   :  { %p410_p0 = scmp.ne.s32.totalorder %s528_s1, %s409_s19  ;;  %p413_p1 = scmp.lt.u32.totalorder %s409_s19, %s528_s1 }
   0x4   :  { %p415_p2 = pnand %p413_p1, %p410_p0 }
   0x6   :  { %418 = shalt.err (!%p415_p2)
}
   0x7   :  { %s419_s24 = scalar_lea.vmem %s19_s16, 128  ;;  %p424_p4 = scmp.lt.s32.totalorder %s19_s16, %s19_s16 }
   0x8   :  { %p420_p3 = scmp.ne.s32.totalorder %s19_s16, %s419_s24  ;;  %p425_p5 = scmp.lt.s32.totalorder %s419_s24, %s419_s24 }
   0xa   :  { %p426_p6 = por %p425_p5, %p424_p4 }
   0xc   :  { %p427_p7 = pnand %p426_p6, %p420_p3 }
   0xe   :  { %430 = shalt.err (!%p427_p7)
}
   0xf   :  { %21 = dma.hbm_to_vmem [thread:$0]  %s528_s1, 128, %s19_s16, [#allocation3]  }
  0x10   :  { %431 = dma.done.wait [#allocation3], 128  }
  0x11   :  { %432 = vsyncadd [#allocation3], 4294967168  ;;  %v34_v0 = vlaneseq  ;;  %v434_v1 = vmov 0   ;;  %v435_v2 = vmov 0.0|0.0   ;;  %vm46_vm0 = vcmask 1041408   ;;  %v29_v6 = vld [vmem:[%s527_s0] sm:$0xff] }
  0x12   :  { %404 = vset.pattern.permute.xlu0 %v434_v1  ;;  %385 = vmatprep.subr.bf16.mxu0 %v435_v2  ;;  %v33_v5 = vld [vmem:[%s530_s3] sm:$0x1]  ;;  %v32_v8 = vld [vmem:[%s529_s2 + $0x8] sm:$0x3]  ;;  %vm436_vm2 = vmmov 1   ;;  %vm42_vm4 = vcmask 80896  }
  0x13   :  { %v297_v3 = vshrl.u32 %v34_v0, 7  ;;  %389 = vmatprep.subr.bf16.mxu1 %v435_v2  ;;  %v31_v7 = vld [vmem:[%s529_s2] sm:$0xff]  ;;  %vm304_vm1 = vcmp.gt.f32.partialorder %v33_v5, 0.5  ;;  %37 = vperm.xlu0 %404, %v29_v6   ;;  %vm387_vm3 = vmpackc.low %vm46_vm0, %vm436_vm2  ;;  %v216_v12 = vmul.f32 %v32_v8, %v32_v8  ;;  %vm437_vm5 = vmmov 0   ;;  %v30_v17 = vld [vmem:[#allocation2] sm:$0xff] }
  0x14   :  { %v215_v9 = vmul.f32 %v31_v7, %v31_v7  ;;  %v306_v10 = vsel %vm304_vm1, 1, %v434_v1  ;;  %v386_v11 = vpack.c.bf16 %v32_v8, %v31_v7  ;;  %v438_v13 = vmov 0.0   ;;  %vm494_vm6 = vmpackc.low %vm42_vm4, %vm42_vm4 }
  0x15   :  { %v298_v4 = vsub.s32 0, %v297_v3  ;;  %368 = vmatprep.mubr.msk.f32.mxu0 %vm437_vm5, %v438_v13  ;;  %375 = vmatprep.mubr.msk.f32.mxu1 %vm437_vm5, %v438_v13  ;;  %v211_v18 = vmul.f32 %v30_v17, %v30_v17  ;;  %v35_v20 = vand.u32 127, %v34_v0  ;;  %v439_v24 = vmov 1.0  }
  0x16   :  { %388 = vmatpush3.bf16.msk.msra.mxu0 %vm387_vm3, %v386_v11  ;;  %v394_v16 = vpack.c.bf16 %v216_v12, %v215_v9  ;;  %392 = vmatpush3.bf16.xpose.msk.msra.mxu1 %vm494_vm6, %v386_v11  ;;  %vm337_vm15 = vcmask 7168   ;;  %vm339_vm1 = vcmask 15368  }
  0x17   :  { %v310_v15 = vrot.slane %v306_v10, %v298_v4  ;;  %393 = vmatprep.subr.bf16.mxu0 %v435_v2  ;;  %v212_v19 = vsel %vm42_vm4, %v211_v18, 0.0 }
  0x19   :  { %vm311_vm7 = vcmp.eq.s32.totalorder %v310_v15, 1 }
  0x1d   :  { %376 = vmatmul.mubr.msk.f32.vlgmr.msra.gmra.mrb[0].mxu1 %vm42_vm4, %v30_v17 }
  0x32   :  { %213 = vadd.xlane.f32.xlu0 %v212_v19 }
  0x92   :  { %v38_v21 = vpop.permute.xlu0 %37 }
  0x93   :  { %vm39_vm8 = vcmp.eq.s32.totalorder %v38_v21, %v35_v20 }
  0x94   :  { %v346_v22 = vsel %vm39_vm8, 1.0, %v438_v13  ;;  %vm305_vm9 = vmxor %vm39_vm8, %vm436_vm2 }
  0x95   :  { %369 = vmatmul.mubr.msk.f32.vlgmr.msra.gmra.mrb[0].mxu0 %vm42_vm4, %v346_v22  ;;  %vm507_vm10 = vmand %vm311_vm7, %vm305_vm9 }
  0x96   :  { %396 = vmatpush3.bf16.xpose.msk.msra.mxu0 %vm494_vm6, %v394_v16  ;;  %382 = vmatprep.mubr.msk.f32.mxu0 %vm437_vm5, %v438_v13 }
  0x9d   :  { %383 = vmatmul.mubr.msk.f32.vlgmr.msra.gmra.mrb[2].mxu0 %vm42_vm4, %v439_v24 }
  0xbf   :  { %v214_v33 = vpop.xlane.xlu0 %213 }
  0xf0   :  { %v207_v25 = vpop.f32.mrb[0].mxu1 }
  0xf1   :  { %v377_v26 = vpop.f32.mrb[1].mxu1  ;;  %v301_v35 = vmul.f32 2.0, %v207_v25 }
 0x168   :  { %v116_v27 = vpop.f32.mrb[0].mxu0 }
 0x169   :  { %v120_v28 = vsub.f32 %v30_v17, %v116_v27  ;;  %v370_v29 = vpop.f32.mrb[1].mxu0 }
 0x16b   :  { %v121_v30 = vmul.f32 %v120_v28, %v120_v28 }
 0x16d   :  { %v122_v31 = vsel %vm42_vm4, %v121_v30, 0.0 }
 0x16e   :  { %123 = vadd.xlane.f32.xlu1 %v122_v31 }
 0x170   :  { %v292_v32 = vpop.f32.mrb[2].mxu0 }
 0x171   :  { %v299_v34 = vrot.slane %v292_v32, %v298_v4  ;;  %v384_v36 = vpop.f32.mrb[3].mxu0 }
 0x173   :  { %v300_v37 = vadd.f32 %v299_v34, %v214_v33 }
 0x175   :  { %v302_v38 = vsub.f32 %v300_v37, %v301_v35 }
 0x177   :  { %v303_v39 = vmax.f32 %v302_v38, 1e-12 }
 0x179   :  { %v313_v40 = vsel %vm507_vm10, %v303_v39, inf }
 0x17a   :  { %v314_v41 = vsel %vm42_vm4, %v313_v40, inf }
 0x17b   :  { %315 = vmin.xlane.f32.xlu1 %v314_v41 }
 0x1fb   :  { %v124_v42 = vpop.xlane.xlu1 %123 }
 0x1fc   :  { %v125_v43 = vmax.f32 %v124_v42, 1e-12 }
 0x1fe   :  { %405 = vrsqrt.f32 %v125_v43  ;;  %vm128_vm11 = vcmp.eq.f32.partialorder %v125_v43, inf  ;;  %v131_v50 = vand.u32 2147483648, %v125_v43  ;;  %vm130_vm13 = vcmp.eq.f32.partialorder %v125_v43, 0.0 }
 0x208   :  { %v316_v44 = vpop.xlane.xlu1 %315  ;;  %v406_v45 = vpop.eup %405 }
 0x209   :  { %407 = vrsqrt.f32 %v316_v44  ;;  %v127_v46 = vmul.f32 %v406_v45, %v125_v43  ;;  %vm319_vm12 = vcmp.eq.f32.partialorder %v316_v44, inf  ;;  %v322_v51 = vand.u32 2147483648, %v316_v44 }
 0x20a   :  { %vm321_vm14 = vcmp.eq.f32.partialorder %v316_v44, 0.0 }
 0x20b   :  { %v129_v48 = vsel %vm128_vm11, %v125_v43, %v127_v46 }
 0x20c   :  { %v132_v53 = vsel %vm130_vm13, %v131_v50, %v129_v48 }
 0x213   :  { %v408_v47 = vpop.eup %407 }
 0x214   :  { %v318_v49 = vmul.f32 %v408_v47, %v316_v44 }
 0x216   :  { %v320_v52 = vsel %vm319_vm12, %v316_v44, %v318_v49 }
 0x217   :  { %v323_v54 = vsel %vm321_vm14, %v322_v51, %v320_v52 }
 0x218   :  { %v330_v55 = vsub.f32 %v132_v53, %v323_v54  ;;  %vm334_vm0 = vcmp.gt.f32.partialorder %v323_v54, %v132_v53 }
 0x219   :  { %v336_v57 = vsel %vm334_vm0, 1.0, %v438_v13 }
 0x21a   :  { %v332_v56 = vmax.f32 %v330_v55, 0.0 }
 0x21c   :  { %338 = vst.msk [vmem:[%s531_s4] sm:$0xff] %vm337_vm15, %v332_v56 }
 0x21d   :  { %340 = vst.msk [vmem:[%s531_s4] sm:$0xff] %vm339_vm1, %v336_v57 }
 0x21e   :  { %345 = vsyncpa [#allocation3], 1 }

</bundles_post_ra>
